<compile_context>
chip_gen: v7x
topology: tpu7x:2x2x1
jax: 0.10.0
libtpu: 0.0.40
codegen_flags: <defaults>
</compile_context>

<pallas_src>
import functools

import jax
import jax.numpy as jnp
from jax.experimental import pallas as pl
from jax.experimental.pallas import tpu as pltpu

QMAX = 255.0   # num_bits = 8 -> qmax = 255, qmin = 0
_EPS = 1e-12   # guard against scale == 0 for identically-zero tensors


def _scale_zp(t_min, t_max):
    # calcScaleZeroPoint: scale = (max-min)/255 ; zp = round(clip(255 - max/scale, 0, 255))
    scale = jnp.maximum((t_max - t_min) / QMAX, _EPS)
    zp = jnp.round(jnp.clip(QMAX - t_max / scale, 0.0, QMAX))
    return scale, zp


def _round_up(v, m):
    return (v + m - 1) // m * m


def _qconv_kernel(qp_ref, x_ref, w_ref, b_ref, mask_ref,
                  y_ref, ymin_ref, ymax_ref, *, taps, m_tile, m_halo):
    """One (batch, M-tile) step: fake-quant slice, fused-K matmul, bias, tile min/max."""
    zp_i = qp_ref[0]       # input zero point
    inv_si = qp_ref[1]     # 1 / s_i   (reciprocal precomputed -> multiply, not divide)
    s_prod = qp_ref[2]     # s_i * s_w (single f32 rescale of the integer-grid accumulator)

    m0 = pl.multiple_of(pl.program_id(1) * m_tile, 128)

    # Fake-quantize this tile's halo-extended activation slice ONCE, on the integer grid.
    xm = x_ref[0, :, pl.ds(m0, m_halo)]                                   # (C_pad, m_halo) f32
    q = jnp.round(jnp.clip(zp_i + xm * inv_si, 0.0, QMAX)) - zp_i         # integers in [-255,255]

    # Stack the KH*KW statically-shifted slices along the contraction axis (C_pad is a
    # multiple of 8 -> every concat piece is sublane-tile aligned), cast once to bf16,
    # then ONE fused MXU matmul with K = KH*KW*C_pad and f32 accumulation.
    xk = jnp.concatenate([q[:, off:off + m_tile] for off in taps], axis=0)
    y = s_prod * jnp.dot(w_ref[...], xk.astype(jnp.bfloat16),
                         preferred_element_type=jnp.float32) + b_ref[...]  # (O, m_tile) f32
    y_ref[0] = y

    # Per-tile output min/max over VALID dense positions only (mask strips wrap-around
    # "garbage" columns, stride-skipped positions, and 128-padding columns).
    valid = mask_ref[...] > 0.5                                            # (1, m_tile)
    big = jnp.float32(3.4e38)
    ymin = jnp.min(jnp.where(valid, y, big))
    ymax = jnp.max(jnp.where(valid, y, -big))
    ymin_ref[...] = jnp.zeros(ymin_ref.shape, jnp.float32) + ymin
    ymax_ref[...] = jnp.zeros(ymax_ref.shape, jnp.float32) + ymax


def _fake_quant_kernel(qp_ref, t_ref, o_ref):
    """Elementwise FakeQuantize with SMEM scalar params (pass 2: output quantization)."""
    zp = qp_ref[0]
    inv_s = qp_ref[1]
    s = qp_ref[2]
    qv = jnp.round(jnp.clip(zp + t_ref[...] * inv_s, 0.0, QMAX))
    o_ref[...] = s * (qv - zp)


@functools.partial(jax.jit, static_argnames=("stride", "padding", "dilation"))
def qconv2d_forward(x, weight, bias, stride=(1, 1), padding=(1, 1), dilation=(1, 1)):
    """x: (N, C, H, W) f32 -> (N, O, Hout, Wout) f32 (NCHW, like F.conv2d), groups=1."""
    N, C, H, W = x.shape
    O, Cw, KH, KW = weight.shape
    assert Cw == C, "groups=1 only"
    sh, sw = stride
    ph, pw = padding
    dh, dw = dilation

    f32 = jnp.float32
    x = x.astype(f32)
    weight = weight.astype(f32)
    bias = bias.astype(f32)

    Hp, Wp = H + 2 * ph, W + 2 * pw
    Hd = Hp - dh * (KH - 1)                 # dense (stride-1) output height
    Wd = Wp - dw * (KW - 1)                 # valid dense output width
    H_out = (Hd - 1) // sh + 1
    W_out = (Wd - 1) // sw + 1
    Mp = Hd * Wp                            # flattened dense output per batch (incl. garbage cols)
    KT = KH * KW
    C_pad = _round_up(C, 8)                 # aligned concat pieces; padded channels contribute 0

    # Lane-dense M tiling: M_TILE multiple of 128, Mp padded to a multiple of M_TILE.
    M_TILE = min(2048, _round_up(Mp, 128))
    Mp_pad = _round_up(Mp, M_TILE)
    n_m = Mp_pad // M_TILE
    max_off = dh * (KH - 1) * Wp + dw * (KW - 1)
    halo = _round_up(max_off, 128)
    M_HALO = M_TILE + halo
    L = Mp_pad + halo                       # flattened x length (every halo slice stays in range)

    taps = tuple(kh * dh * Wp + kw * dw for kh in range(KH) for kw in range(KW))

    # ---- qi / qw statistics + params: cheap fused XLA reductions ----
    s_i, zp_i = _scale_zp(jnp.minimum(jnp.min(x), 0.0), jnp.maximum(jnp.max(x), 0.0))
    s_w, zp_w = _scale_zp(jnp.minimum(jnp.min(weight), 0.0), jnp.maximum(jnp.max(weight), 0.0))

    # Weight fake-quantized once, kept on the integer grid, fused-K layout (O, KT*C_pad), bf16.
    w_int = jnp.round(jnp.clip(zp_w + weight * (1.0 / s_w), 0.0, QMAX)) - zp_w
    w_t = jnp.transpose(w_int, (0, 2, 3, 1))                       # (O, KH, KW, C)
    w_t = jnp.pad(w_t, ((0, 0), (0, 0), (0, 0), (0, C_pad - C)))   # zero-pad channels
    w_k = w_t.reshape(O, KT * C_pad).astype(jnp.bfloat16)

    # Zero-padded input (spatial + channel), spatially flattened per channel.
    # FakeQuantize(0) == 0 exactly (zp integer in [0,255]) -> pad-then-quantize is exact.
    x_pad = jnp.pad(x, ((0, 0), (0, C_pad - C), (ph, ph), (pw, pw)))
    x_flat = jnp.pad(x_pad.reshape(N, C_pad, Hp * Wp), ((0, 0), (0, 0), (0, L - Hp * Wp)))

    # Validity mask over the dense flattened output (in-range + stride-aligned positions).
    hd = jnp.arange(Hd)
    wd = jnp.arange(Wp)
    row_ok = (hd % sh == 0) & (hd <= sh * (H_out - 1))
    col_ok = (wd % sw == 0) & (wd <= sw * (W_out - 1))
    mask = (row_ok[:, None] & col_ok[None, :]).astype(f32).reshape(1, Mp)
    mask = jnp.pad(mask, ((0, 0), (0, Mp_pad - Mp)))

    qi_params = jnp.stack([zp_i, 1.0 / s_i, s_i * s_w]).astype(f32)   # SMEM scalars
    b2 = bias.reshape(O, 1)

    kernel1 = functools.partial(_qconv_kernel, taps=taps, m_tile=M_TILE, m_halo=M_HALO)
    y_dense, ymin_t, ymax_t = pl.pallas_call(
        kernel1,
        grid=(N, n_m),
        in_specs=[
            pl.BlockSpec(memory_space=pltpu.MemorySpace.SMEM),               # qi scalars
            pl.BlockSpec((1, C_pad, L), lambda n, m: (n, 0, 0)),             # x (resident over m)
            pl.BlockSpec((O, KT * C_pad), lambda n, m: (0, 0)),              # fused-K fq weight
            pl.BlockSpec((O, 1), lambda n, m: (0, 0)),                       # bias
            pl.BlockSpec((1, M_TILE), lambda n, m: (0, m)),                  # validity mask
        ],
        out_specs=[
            pl.BlockSpec((1, O, M_TILE), lambda n, m: (n, 0, m)),            # lane-dense output
            pl.BlockSpec((1, 1, 8, 128), lambda n, m: (n, m, 0, 0)),         # per-tile min
            pl.BlockSpec((1, 1, 8, 128), lambda n, m: (n, m, 0, 0)),         # per-tile max
        ],
        out_shape=[
            jax.ShapeDtypeStruct((N, O, Mp_pad), f32),
            jax.ShapeDtypeStruct((N, n_m, 8, 128), f32),
            jax.ShapeDtypeStruct((N, n_m, 8, 128), f32),
        ],
        compiler_params=pltpu.CompilerParams(
            dimension_semantics=("parallel", "parallel"),
            vmem_limit_bytes=48 * 1024 * 1024),
    )(qi_params, x_flat, w_k, b2, mask)

    # ---- qo statistics (reduce the per-tile min/max) ----
    y_min = jnp.minimum(jnp.min(ymin_t), 0.0)
    y_max = jnp.maximum(jnp.max(ymax_t), 0.0)
    s_o, zp_o = _scale_zp(y_min, y_max)
    qo_params = jnp.stack([zp_o, 1.0 / s_o, s_o]).astype(f32)

    # ---- pass 2: fake-quantize the dense output directly (same lane-dense tiling; no
    # intermediate XLA strided-slice materialization between the two passes). ----
    y_fq = pl.pallas_call(
        _fake_quant_kernel,
        grid=(N, n_m),
        in_specs=[
            pl.BlockSpec(memory_space=pltpu.MemorySpace.SMEM),               # qo scalars
            pl.BlockSpec((1, O, M_TILE), lambda n, m: (n, 0, m)),
        ],
        out_specs=pl.BlockSpec((1, O, M_TILE), lambda n, m: (n, 0, m)),
        out_shape=jax.ShapeDtypeStruct((N, O, Mp_pad), f32),
        compiler_params=pltpu.CompilerParams(
            dimension_semantics=("parallel", "parallel"),
            vmem_limit_bytes=48 * 1024 * 1024),
    )(qo_params, y_dense)

    # Single final strided slice: strip garbage/padding columns and apply stride subsampling.
    y4 = y_fq[:, :, :Mp].reshape(N, O, Hd, Wp)
    return y4[:, :, :sh * (H_out - 1) + 1:sh, :sw * (W_out - 1) + 1:sw]


if __name__ == "__main__":
    key = jax.random.PRNGKey(0)
    kx, kw, kb = jax.random.split(key, 3)

    # Conv2d(in_channels=4, out_channels=8, kernel_size=3, stride=1, padding=1, bias=True)
    N, C, H, W = 2, 4, 16, 16
    O, KH, KW = 8, 3, 3

    x = jax.random.normal(kx, (N, C, H, W), dtype=jnp.float32)
    fan_in = C * KH * KW
    bound = 1.0 / (fan_in ** 0.5)  # PyTorch default Conv2d init range
    weight = jax.random.uniform(kw, (O, C, KH, KW), jnp.float32, -bound, bound)
    bias = jax.random.uniform(kb, (O,), jnp.float32, -bound, bound)

    out = qconv2d_forward(x, weight, bias, stride=(1, 1), padding=(1, 1), dilation=(1, 1))
    out = jax.block_until_ready(out)

    assert out.shape == (N, O, H, W), out.shape
    assert bool(jnp.all(jnp.isfinite(out)))
    print("KERNEL_OK")
</pallas_src>

<mosaic_0001>
module attributes {stable_mosaic.version = 11 : i64} {
  func.func @_fake_quant_kernel(%arg0: i32, %arg1: i32, %arg2: memref<3xf32, #tpu.memory_space<smem>>, %arg3: memref<1x8x384xf32, #tpu.memory_space<vmem>>, %arg4: memref<1x8x384xf32, #tpu.memory_space<vmem>>) attributes {dimension_semantics = [#tpu.dimension_semantics<parallel>, #tpu.dimension_semantics<parallel>], iteration_bounds = array<i64: 2, 1>, scalar_prefetch = 0 : i64, scratch_operands = 0 : i64, tpu.core_type = #tpu.core_type<tc>, window_params = [{transform_indices = @transform_0, window_bounds = array<i64: 3>}, {transform_indices = @transform_1, window_bounds = array<i64: 1, 8, 384>}, {transform_indices = @transform_2, window_bounds = array<i64: 1, 8, 384>}]} {
    %c0 = arith.constant 0 : index
    %0 = memref.load %arg2[%c0] : memref<3xf32, #tpu.memory_space<smem>>
    %c1 = arith.constant 1 : index
    %1 = memref.load %arg2[%c1] : memref<3xf32, #tpu.memory_space<smem>>
    %c2 = arith.constant 2 : index
    %2 = memref.load %arg2[%c2] : memref<3xf32, #tpu.memory_space<smem>>
    %c0_0 = arith.constant 0 : index
    %c0_1 = arith.constant 0 : index
    %c0_2 = arith.constant 0 : index
    %3 = vector.load %arg3[%c0_0, %c0_1, %c0_2] : memref<1x8x384xf32, #tpu.memory_space<vmem>>, vector<1x8x384xf32>
    %4 = vector.broadcast %1 : f32 to vector<1x8x384xf32>
    %5 = arith.mulf %3, %4 : vector<1x8x384xf32>
    %6 = vector.broadcast %0 : f32 to vector<1x8x384xf32>
    %7 = arith.addf %6, %5 : vector<1x8x384xf32>
    %cst = arith.constant 0.000000e+00 : f32
    %cst_3 = arith.constant 2.550000e+02 : f32
    %8 = vector.broadcast %cst : f32 to vector<1x8x384xf32>
    %9 = arith.maximumf %8, %7 : vector<1x8x384xf32>
    %10 = vector.broadcast %cst_3 : f32 to vector<1x8x384xf32>
    %11 = arith.minimumf %10, %9 : vector<1x8x384xf32>
    %12 = math.roundeven %11 : vector<1x8x384xf32>
    %13 = vector.broadcast %0 : f32 to vector<1x8x384xf32>
    %14 = arith.subf %12, %13 : vector<1x8x384xf32>
    %15 = vector.broadcast %2 : f32 to vector<1x8x384xf32>
    %16 = arith.mulf %15, %14 : vector<1x8x384xf32>
    %c0_4 = arith.constant 0 : index
    %c0_5 = arith.constant 0 : index
    %c0_6 = arith.constant 0 : index
    %17 = vector.load %arg4[%c0_4, %c0_5, %c0_6] : memref<1x8x384xf32, #tpu.memory_space<vmem>>, vector<1x8x384xf32>
    tpu.vector_store %arg4[%c0_4, %c0_5, %c0_6], %16 {strides = array<i32>} : memref<1x8x384xf32, #tpu.memory_space<vmem>>, vector<1x8x384xf32>,
    return
  }
  func.func @transform_0(%arg0: i32, %arg1: i32) -> i32 {
    %c0_i32 = arith.constant 0 : i32
    %c0_i32_0 = arith.constant 0 : i32
    return %c0_i32 : i32
  }
  func.func @transform_1(%arg0: i32, %arg1: i32) -> (i32, i32, i32) {
    %c0_i32 = arith.constant 0 : i32
    %c0_i32_0 = arith.constant 0 : i32
    return %arg0, %c0_i32, %arg1 : i32, i32, i32
  }
  func.func @transform_2(%arg0: i32, %arg1: i32) -> (i32, i32, i32) {
    %c0_i32 = arith.constant 0 : i32
    %c0_i32_0 = arith.constant 0 : i32
    return %arg0, %c0_i32, %arg1 : i32, i32, i32
  }
}

module attributes {stable_mosaic.version = 11 : i64} {
  func.func @_qconv_kernel(%arg0: i32, %arg1: i32, %arg2: memref<3xf32, #tpu.memory_space<smem>>, %arg3: memref<1x8x512xf32, #tpu.memory_space<vmem>>, %arg4: memref<8x72xbf16, #tpu.memory_space<vmem>>, %arg5: memref<8x1xf32, #tpu.memory_space<vmem>>, %arg6: memref<1x384xf32, #tpu.memory_space<vmem>>, %arg7: memref<1x8x384xf32, #tpu.memory_space<vmem>>, %arg8: memref<1x1x8x128xf32, #tpu.memory_space<vmem>>, %arg9: memref<1x1x8x128xf32, #tpu.memory_space<vmem>>) attributes {dimension_semantics = [#tpu.dimension_semantics<parallel>, #tpu.dimension_semantics<parallel>], iteration_bounds = array<i64: 2, 1>, scalar_prefetch = 0 : i64, scratch_operands = 0 : i64, tpu.core_type = #tpu.core_type<tc>, window_params = [{transform_indices = @transform_0, window_bounds = array<i64: 3>}, {transform_indices = @transform_1, window_bounds = array<i64: 1, 8, 512>}, {pipeline_mode = #tpu.pipeline_mode<synchronous>, transform_indices = @transform_2, window_bounds = array<i64: 8, 72>}, {pipeline_mode = #tpu.pipeline_mode<synchronous>, transform_indices = @transform_3, window_bounds = array<i64: 8, 1>}, {transform_indices = @transform_4, window_bounds = array<i64: 1, 384>}, {transform_indices = @transform_5, window_bounds = array<i64: 1, 8, 384>}, {transform_indices = @transform_6, window_bounds = array<i64: 1, 1, 8, 128>}, {transform_indices = @transform_7, window_bounds = array<i64: 1, 1, 8, 128>}]} {
    %c0 = arith.constant 0 : index
    %0 = memref.load %arg2[%c0] : memref<3xf32, #tpu.memory_space<smem>>
    %c1 = arith.constant 1 : index
    %1 = memref.load %arg2[%c1] : memref<3xf32, #tpu.memory_space<smem>>
    %c2 = arith.constant 2 : index
    %2 = memref.load %arg2[%c2] : memref<3xf32, #tpu.memory_space<smem>>
    %c384_i32 = arith.constant 384 : i32
    %3 = arith.muli %arg1, %c384_i32 : i32
    %4 = tpu.assume_multiple %3, 128 : i32
    %c0_0 = arith.constant 0 : index
    %c0_1 = arith.constant 0 : index
    %5 = arith.index_cast %4 : i32 to index
    %6 = vector.load %arg3[%c0_0, %c0_1, %5] : memref<1x8x512xf32, #tpu.memory_space<vmem>>, vector<1x8x512xf32>
    %7 = vector.shape_cast %6 : vector<1x8x512xf32> to vector<8x512xf32>
    %8 = vector.broadcast %1 : f32 to vector<8x512xf32>
    %9 = arith.mulf %7, %8 : vector<8x512xf32>
    %10 = vector.broadcast %0 : f32 to vector<8x512xf32>
    %11 = arith.addf %10, %9 : vector<8x512xf32>
    %cst = arith.constant 0.000000e+00 : f32
    %cst_2 = arith.constant 2.550000e+02 : f32
    %12 = vector.broadcast %cst : f32 to vector<8x512xf32>
    %13 = arith.maximumf %12, %11 : vector<8x512xf32>
    %14 = vector.broadcast %cst_2 : f32 to vector<8x512xf32>
    %15 = arith.minimumf %14, %13 : vector<8x512xf32>
    %16 = math.roundeven %15 : vector<8x512xf32>
    %17 = vector.broadcast %0 : f32 to vector<8x512xf32>
    %18 = arith.subf %16, %17 : vector<8x512xf32>
    %19 = vector.extract_strided_slice %18 {offsets = [0, 0], sizes = [8, 384], strides = [1, 1]} : vector<8x512xf32> to vector<8x384xf32>
    %20 = vector.extract_strided_slice %18 {offsets = [0, 1], sizes = [8, 384], strides = [1, 1]} : vector<8x512xf32> to vector<8x384xf32>
    %21 = vector.extract_strided_slice %18 {offsets = [0, 2], sizes = [8, 384], strides = [1, 1]} : vector<8x512xf32> to vector<8x384xf32>
    %22 = vector.extract_strided_slice %18 {offsets = [0, 18], sizes = [8, 384], strides = [1, 1]} : vector<8x512xf32> to vector<8x384xf32>
    %23 = vector.extract_strided_slice %18 {offsets = [0, 19], sizes = [8, 384], strides = [1, 1]} : vector<8x512xf32> to vector<8x384xf32>
    %24 = vector.extract_strided_slice %18 {offsets = [0, 20], sizes = [8, 384], strides = [1, 1]} : vector<8x512xf32> to vector<8x384xf32>
    %25 = vector.extract_strided_slice %18 {offsets = [0, 36], sizes = [8, 384], strides = [1, 1]} : vector<8x512xf32> to vector<8x384xf32>
    %26 = vector.extract_strided_slice %18 {offsets = [0, 37], sizes = [8, 384], strides = [1, 1]} : vector<8x512xf32> to vector<8x384xf32>
    %27 = vector.extract_strided_slice %18 {offsets = [0, 38], sizes = [8, 384], strides = [1, 1]} : vector<8x512xf32> to vector<8x384xf32>
    %28 = tpu.concatenate %19, %20, %21, %22, %23, %24, %25, %26, %27 in 0 : vector<8x384xf32>, vector<8x384xf32>, vector<8x384xf32>, vector<8x384xf32>, vector<8x384xf32>, vector<8x384xf32>, vector<8x384xf32>, vector<8x384xf32>, vector<8x384xf32> -> vector<72x384xf32>
    %c0_3 = arith.constant 0 : index
    %c0_4 = arith.constant 0 : index
    %29 = vector.load %arg4[%c0_3, %c0_4] : memref<8x72xbf16, #tpu.memory_space<vmem>>, vector<8x72xbf16>
    %30 = arith.truncf %28 : vector<72x384xf32> to vector<72x384xbf16>
    %cst_5 = arith.constant dense<0.000000e+00> : vector<8x384xf32>
    %31 = tpu.matmul %29, %30, %cst_5 {dimension_numbers = #tpu.dot_dimension_numbers<[1], [0], [0], [1], [0, 0, 1, 1], [], []>} : vector<8x72xbf16>, vector<72x384xbf16>, vector<8x384xf32> -> vector<8x384xf32>
    %32 = vector.broadcast %2 : f32 to vector<8x384xf32>
    %33 = arith.mulf %32, %31 : vector<8x384xf32>
    %c0_6 = arith.constant 0 : index
    %c0_7 = arith.constant 0 : index
    %34 = vector.load %arg5[%c0_6, %c0_7] : memref<8x1xf32, #tpu.memory_space<vmem>>, vector<8x1xf32>
    %35 = vector.broadcast %34 : vector<8x1xf32> to vector<8x384xf32>
    %36 = arith.addf %33, %35 : vector<8x384xf32>
    %c0_8 = arith.constant 0 : index
    %c0_9 = arith.constant 0 : index
    %c0_10 = arith.constant 0 : index
    %37 = vector.load %arg7[%c0_8, %c0_9, %c0_10] : memref<1x8x384xf32, #tpu.memory_space<vmem>>, vector<1x8x384xf32>
    %38 = vector.shape_cast %37 : vector<1x8x384xf32> to vector<8x384xf32>
    %39 = vector.shape_cast %36 : vector<8x384xf32> to vector<1x8x384xf32>
    tpu.vector_store %arg7[%c0_8, %c0_9, %c0_10], %39 {strides = array<i32>} : memref<1x8x384xf32, #tpu.memory_space<vmem>>, vector<1x8x384xf32>,
    %c0_11 = arith.constant 0 : index
    %c0_12 = arith.constant 0 : index
    %40 = vector.load %arg6[%c0_11, %c0_12] : memref<1x384xf32, #tpu.memory_space<vmem>>, vector<1x384xf32>
    %cst_13 = arith.constant 5.000000e-01 : f32
    %41 = vector.broadcast %cst_13 : f32 to vector<1x384xf32>
    %42 = arith.cmpf ogt, %40, %41 : vector<1x384xf32>
    %cst_14 = arith.constant 3.400000e+38 : f32
    %43 = vector.shape_cast %42 : vector<1x384xi1> to vector<1x384xi1>
    %44 = vector.broadcast %43 : vector<1x384xi1> to vector<8x384xi1>
    %45 = vector.broadcast %cst_14 : f32 to vector<8x384xf32>
    %46 = arith.select %44, %36, %45 : vector<8x384xi1>, vector<8x384xf32>
    %47 = vector.shape_cast %46 : vector<8x384xf32> to vector<1x8x384xf32>
    %cst_15 = arith.constant dense<0x7F800000> : vector<1xf32>
    %48 = vector.multi_reduction <minimumf>, %47, %cst_15 [1, 2] : vector<1x8x384xf32> to vector<1xf32>
    %49 = vector.shape_cast %48 : vector<1xf32> to vector<1x1x1xf32>
    %50 = vector.extract %49[0, 0, 0] : f32 from vector<1x1x1xf32>
    %cst_16 = arith.constant 0.000000e+00 : f32
    %cst_17 = arith.constant 3.400000e+38 : f32
    %51 = arith.subf %cst_16, %cst_17 : f32
    %52 = vector.shape_cast %42 : vector<1x384xi1> to vector<1x384xi1>
    %53 = vector.broadcast %52 : vector<1x384xi1> to vector<8x384xi1>
    %54 = vector.broadcast %51 : f32 to vector<8x384xf32>
    %55 = arith.select %53, %36, %54 : vector<8x384xi1>, vector<8x384xf32>
    %56 = vector.shape_cast %55 : vector<8x384xf32> to vector<1x8x384xf32>
    %cst_18 = arith.constant dense<0xFF800000> : vector<1xf32>
    %57 = vector.multi_reduction <maximumf>, %56, %cst_18 [1, 2] : vector<1x8x384xf32> to vector<1xf32>
    %58 = vector.shape_cast %57 : vector<1xf32> to vector<1x1x1xf32>
    %59 = vector.extract %58[0, 0, 0] : f32 from vector<1x1x1xf32>
    %cst_19 = arith.constant 0.000000e+00 : f32
    %60 = vector.broadcast %cst_19 : f32 to vector<1x1x8x128xf32>
    %61 = vector.broadcast %50 : f32 to vector<1x1x8x128xf32>
    %62 = arith.addf %60, %61 : vector<1x1x8x128xf32>
    %c0_20 = arith.constant 0 : index
    %c0_21 = arith.constant 0 : index
    %c0_22 = arith.constant 0 : index
    %c0_23 = arith.constant 0 : index
    %63 = vector.load %arg8[%c0_20, %c0_21, %c0_22, %c0_23] : memref<1x1x8x128xf32, #tpu.memory_space<vmem>>, vector<1x1x8x128xf32>
    tpu.vector_store %arg8[%c0_20, %c0_21, %c0_22, %c0_23], %62 {strides = array<i32>} : memref<1x1x8x128xf32, #tpu.memory_space<vmem>>, vector<1x1x8x128xf32>,
    %cst_24 = arith.constant 0.000000e+00 : f32
    %64 = vector.broadcast %cst_24 : f32 to vector<1x1x8x128xf32>
    %65 = vector.broadcast %59 : f32 to vector<1x1x8x128xf32>
    %66 = arith.addf %64, %65 : vector<1x1x8x128xf32>
    %c0_25 = arith.constant 0 : index
    %c0_26 = arith.constant 0 : index
    %c0_27 = arith.constant 0 : index
    %c0_28 = arith.constant 0 : index
    %67 = vector.load %arg9[%c0_25, %c0_26, %c0_27, %c0_28] : memref<1x1x8x128xf32, #tpu.memory_space<vmem>>, vector<1x1x8x128xf32>
    tpu.vector_store %arg9[%c0_25, %c0_26, %c0_27, %c0_28], %66 {strides = array<i32>} : memref<1x1x8x128xf32, #tpu.memory_space<vmem>>, vector<1x1x8x128xf32>,
    return
  }
  func.func @transform_0(%arg0: i32, %arg1: i32) -> i32 {
    %c0_i32 = arith.constant 0 : i32
    %c0_i32_0 = arith.constant 0 : i32
    return %c0_i32 : i32
  }
  func.func @transform_1(%arg0: i32, %arg1: i32) -> (i32, i32, i32) {
    %c0_i32 = arith.constant 0 : i32
    %c0_i32_0 = arith.constant 0 : i32
    %c0_i32_1 = arith.constant 0 : i32
    return %arg0, %c0_i32, %c0_i32_0 : i32, i32, i32
  }
  func.func @transform_2(%arg0: i32, %arg1: i32) -> (i32, i32) {
    %c0_i32 = arith.constant 0 : i32
    %c0_i32_0 = arith.constant 0 : i32
    %c0_i32_1 = arith.constant 0 : i32
    return %c0_i32, %c0_i32_0 : i32, i32
  }
  func.func @transform_3(%arg0: i32, %arg1: i32) -> (i32, i32) {
    %c0_i32 = arith.constant 0 : i32
    %c0_i32_0 = arith.constant 0 : i32
    %c0_i32_1 = arith.constant 0 : i32
    return %c0_i32, %c0_i32_0 : i32, i32
  }
  func.func @transform_4(%arg0: i32, %arg1: i32) -> (i32, i32) {
    %c0_i32 = arith.constant 0 : i32
    %c0_i32_0 = arith.constant 0 : i32
    return %c0_i32, %arg1 : i32, i32
  }
  func.func @transform_5(%arg0: i32, %arg1: i32) -> (i32, i32, i32) {
    %c0_i32 = arith.constant 0 : i32
    %c0_i32_0 = arith.constant 0 : i32
    return %arg0, %c0_i32, %arg1 : i32, i32, i32
  }
  func.func @transform_6(%arg0: i32, %arg1: i32) -> (i32, i32, i32, i32) {
    %c0_i32 = arith.constant 0 : i32
    %c0_i32_0 = arith.constant 0 : i32
    %c0_i32_1 = arith.constant 0 : i32
    return %arg0, %arg1, %c0_i32, %c0_i32_0 : i32, i32, i32, i32
  }
  func.func @transform_7(%arg0: i32, %arg1: i32) -> (i32, i32, i32, i32) {
    %c0_i32 = arith.constant 0 : i32
    %c0_i32_0 = arith.constant 0 : i32
    %c0_i32_1 = arith.constant 0 : i32
    return %arg0, %arg1, %c0_i32, %c0_i32_0 : i32, i32, i32, i32
  }
}

</mosaic_0001>

<bundles_post_ra>
// kernel: qconv2d_forward.3
= control target key start
LH: loop header
LB: loop body
LE: loop exit
PB: predicated region body
PF: predicated region fallthrough
CT: control target
= control target key end

     0   :  { %7 = vsyncpa [#allocation3], 0  ;;  %s440_s9 = smov 0   ;;  %s442_s10 = smov 0   ;;  %s502_s0 = inlined_call_operand.vmem [shape: f32[3], index: 0, kind: input, shape index: {}]   ;;  %s503_s1 = inlined_call_operand.vmem [shape: f32[2,8,384], index: 1, kind: input, shape index: {}]   ;;  %s504_s2 = inlined_call_operand.vmem [shape: f32[2,8,384], index: 2, kind: output, shape index: {}]  }
   0x1   :  { %s444_s11 = smov 0  }
   0x2 LB: > { %s329_s12 = sadd.s32 4294967295, %s422_s11   ;;  %s25_s13 = sadd.s32 1, %s418_s10  ;;  %s422_s11 = sphi %s444_s11, %s13_s11   ;;  %s418_s10 = sphi %s442_s10, %s508_s10   ;;  %s414_s9 = sphi %s440_s9, %s507_s9  }
   0x3   : > { %p27_p0 = scmp.ge.s32.totalorder %s25_s13, 2  ;;  %p331_p1 = scmp.ge.s32.totalorder %s422_s11, 1 }
   0x4   : > { %p107_p2 = scmp.lt.s32.totalorder %s422_s11, 3  ;;  %p465_p4 = scmp.eq.s32.totalorder %s329_s12, 0 }
   0x5   : > { %s510_s13 = smov (%p27_p0, %s25_s13), 0  ;;  %s120_s18 = sshll.u32 %s502_s0, 4  ;;  %s121_s18 = int_to_ptr.vmem [resolvable:$true] %s120_s18 }
   0x6   : > { %p461_p3 = pnand %p331_p1, %p107_p2  ;;  %s381_s19 = scalar_lea.vmem %s121_s18, 16 }
   0x7   : > { %p382_p7 = scmp.ne.s32.totalorder %s121_s18, %s381_s19  ;;  %p389_p11 = scmp.lt.s32.totalorder %s121_s18, %s121_s18 }
   0x8   : > { %p350_p5 = pneg %p461_p3  ;;  %p390_p12 = scmp.lt.s32.totalorder %s381_s19, %s381_s19 }
   0xa   : > { %p351_p6 = pnand %p465_p4, %p350_p5  ;;  %p391_p13 = por %p390_p12, %p389_p11 }
   0xc   : > { %p383_p8 = pneg %p351_p6 }
   0xe   : > { %p384_p9 = pnand %p383_p8, %p382_p7 }
  0x10   : > { %p385_p10 = pneg %p384_p9 }
  0x12   : > { %p392_p0 = pnand %p391_p13, %p385_p10 }
  0x14   : > { %395 = shalt.err (!%p392_p0)
}
  0x15   : > { %s424_s20 = smov [#allocation2]   ;;  %146 = sbr.rel (%p461_p3) target bundleno = 55 (0x37), region = 28 }
  0x16   : > { %353 = dma.vmem_to_smem (!%p351_p6), %s121_s18, 16, %s424_s20, [#allocation3]  }
  0x1c   : > { %409 = dma.done.wait (%p465_p4), [#allocation3], 16  }
  0x1d   : > { %411 = vsyncadd (%p465_p4), [#allocation3], 4294967280 }
  0x1e   : > { %152 = sfence }
  0x1f   : > { %p178_p1 = scmp.lt.s32.totalorder %s414_s9, 1  ;;  %s197_s21 = sld [smem:[#allocation2]] }
  0x20   : > { %s338_s22 = sld [smem:[#allocation2 + $0x1]]  ;;  %s339_s27 = sld [smem:[#allocation2 + $0x2]] }
  0x21   : > { %s512_s9 = smov (!%p178_p1, %s414_s9), 1 }
  0x22   : > { %s342_s23 = smul.u32 24, %s512_s9 }
  0x24   : > { %s185_s26 = scalar_lea.vmem %s503_s1, %s342_s23  ;;  %s195_s30 = scalar_lea.vmem %s504_s2, %s342_s23 }
  0x25   : > { %v207_v0 = vstv %s197_s21  ;;  %v200_v1 = vld [vmem:[%s185_s26] sm:$0xff]  ;;  %v201_v2 = vld [vmem:[%s185_s26 + $0x8] sm:$0xff]  ;;  %v202_v3 = vld [vmem:[%s185_s26 + $0x10] sm:$0xff] }
  0x26   : > { %v203_v4 = vstv %s338_s22  ;;  %v223_v20 = vstv %s339_s27 }
  0x27   : > { %v204_v5 = vmul.f32 %v203_v4, %v200_v1  ;;  %v205_v6 = vmul.f32 %v203_v4, %v201_v2  ;;  %v206_v7 = vmul.f32 %v203_v4, %v202_v3 }
  0x29   : > { %v208_v8 = vadd.f32 %v207_v0, %v204_v5  ;;  %v209_v9 = vadd.f32 %v207_v0, %v205_v6  ;;  %v210_v10 = vadd.f32 %v207_v0, %v206_v7 }
  0x2b   : > { %v211_v11 = vmax.f32 %v208_v8, 0.0  ;;  %v212_v12 = vmax.f32 %v209_v9, 0.0  ;;  %v213_v13 = vmax.f32 %v210_v10, 0.0 }
  0x2d   : > { %v214_v14 = vmin.f32 %v211_v11, 255.0  ;;  %v215_v15 = vmin.f32 %v212_v12, 255.0  ;;  %v216_v16 = vmin.f32 %v213_v13, 255.0 }
  0x2f   : > { %v343_v17 = vround.rtne.f32 %v214_v14  ;;  %v344_v18 = vround.rtne.f32 %v215_v15  ;;  %v345_v19 = vround.rtne.f32 %v216_v16 }
  0x31   : > { %v220_v21 = vsub.f32 %v343_v17, %v207_v0  ;;  %v221_v22 = vsub.f32 %v344_v18, %v207_v0  ;;  %v222_v23 = vsub.f32 %v345_v19, %v207_v0 }
  0x33   : > { %v224_v24 = vmul.f32 %v223_v20, %v220_v21  ;;  %v225_v25 = vmul.f32 %v223_v20, %v221_v22  ;;  %v226_v26 = vmul.f32 %v223_v20, %v222_v23 }
  0x35   : > { %227 = vst [vmem:[%s195_s30] sm:$0xff] %v224_v24  ;;  %228 = vst [vmem:[%s195_s30 + $0x8] sm:$0xff] %v225_v25 }
  0x36   : > { %229 = vst [vmem:[%s195_s30 + $0x10] sm:$0xff] %v226_v26 }
  0x37 PF: > { %s13_s11 = sadd.s32 1, %s422_s11   ;;  %s507_s9 = smov %s418_s10 }
  0x38   : > { %p10_p2 = scmp.ge.s32.totalorder %s13_s11, 4   ;;  %s508_s10 = smov %s510_s13 }
  0x3a   :  { %12 = sbr.rel (!%p10_p2) target bundleno = 2 (0x2), region = 63 }
  0x41   :  { %260 = vsyncpa [#allocation3], 1 }
  0x42   :  { %262 = vsyncpa [#allocation3 + $0x1], 1 }

// kernel: qconv2d_forward.2
= control target key start
LH: loop header
LB: loop body
LE: loop exit
PB: predicated region body
PF: predicated region fallthrough
CT: control target
= control target key end

     0   :  { %13 = vsyncpa [#allocation3], 0  ;;  %s1171_s24 = smov 0   ;;  %s1173_s25 = smov 0   ;;  %s1291_s0 = inlined_call_operand.vmem [shape: f32[3], index: 0, kind: input, shape index: {}]   ;;  %s1292_s1 = inlined_call_operand.vmem [shape: f32[2,8,512], index: 1, kind: input, shape index: {}]   ;;  %s1293_s2 = inlined_call_operand.vmem [shape: bf16[8,72], index: 2, kind: input, shape index: {}]   ;;  %s1294_s3 = inlined_call_operand.vmem [shape: f32[8,1], index: 3, kind: input, shape index: {}]   ;;  %s1295_s4 = inlined_call_operand.vmem [shape: f32[1,384], index: 4, kind: input, shape index: {}]   ;;  %s1296_s5 = inlined_call_operand.vmem [shape: f32[2,8,384], index: 5, kind: output, shape index: {0}]   ;;  %s1297_s6 = inlined_call_operand.vmem [shape: f32[2,1,8,128], index: 6, kind: output, shape index: {1}]   ;;  %s1298_s7 = inlined_call_operand.vmem [shape: f32[2,1,8,128], index: 7, kind: output, shape index: {2}]  }
   0x1   :  { %s1175_s26 = smov 0  }
   0x2 LB: > { %s903_s27 = sadd.s32 4294967295, %s1117_s26   ;;  %s31_s28 = sadd.s32 1, %s1113_s25  ;;  %s1117_s26 = sphi %s1175_s26, %s19_s26   ;;  %s1113_s25 = sphi %s1173_s25, %s1302_s25   ;;  %s1109_s24 = sphi %s1171_s24, %s1301_s24  }
   0x3   : > { %p33_p0 = scmp.ge.s32.totalorder %s31_s28, 2  ;;  %p905_p1 = scmp.ge.s32.totalorder %s1117_s26, 1 }
   0x4   : > { %p235_p2 = scmp.lt.s32.totalorder %s1117_s26, 3  ;;  %p1196_p4 = scmp.eq.s32.totalorder %s903_s27, 0 }
   0x5   : > { %s1304_s28 = smov (%p33_p0, %s31_s28), 0  ;;  %s248_s10 = sshll.u32 %s1291_s0, 4  ;;  %s249_s10 = int_to_ptr.vmem [resolvable:$true] %s248_s10 }
   0x6   : > { %p1192_p3 = pnand %p905_p1, %p235_p2  ;;  %s1076_s11 = scalar_lea.vmem %s249_s10, 16 }
   0x7   : > { %p1077_p7 = scmp.ne.s32.totalorder %s249_s10, %s1076_s11  ;;  %p1084_p11 = scmp.lt.s32.totalorder %s249_s10, %s249_s10 }
   0x8   : > { %p957_p5 = pneg %p1192_p3  ;;  %p1085_p12 = scmp.lt.s32.totalorder %s1076_s11, %s1076_s11 }
   0xa   : > { %p958_p6 = pnand %p1196_p4, %p957_p5  ;;  %p1086_p13 = por %p1085_p12, %p1084_p11 }
   0xc   : > { %p1078_p8 = pneg %p958_p6 }
   0xe   : > { %p1079_p9 = pnand %p1078_p8, %p1077_p7 }
  0x10   : > { %p1080_p10 = pneg %p1079_p9 }
  0x12   : > { %p1087_p0 = pnand %p1086_p13, %p1080_p10 }
  0x14   : > { %1090 = shalt.err (!%p1087_p0)
}
  0x15   : > { %s1119_s12 = smov [#allocation2]   ;;  %283 = sbr.rel (%p1192_p3) target bundleno = 634 (0x27a), region = 40 }
  0x16   : > { %960 = dma.vmem_to_smem (!%p958_p6), %s249_s10, 16, %s1119_s12, [#allocation3]  }
  0x1c   : > { %1104 = dma.done.wait (%p1196_p4), [#allocation3], 16  }
  0x1d   : > { %1106 = vsyncadd (%p1196_p4), [#allocation3], 4294967280 }
  0x1e   : > { %289 = sfence }
  0x1f   : > { %p338_p1 = scmp.lt.s32.totalorder %s1109_s24, 1  ;;  %s373_s13 = sld [smem:[#allocation2]]  ;;  %v1120_v30 = vmov 0.0   ;;  %v1128_v33 = vmov 0   ;;  %vm1129_vm0 = vmmov 0   ;;  %v650_v35 = vld [vmem:[%s1294_s3] sm:$0xff] }
  0x20   : > { %s916_s14 = sld [smem:[#allocation2 + $0x1]]  ;;  %930 = vmatprep.subr.bf16.mxu1 %v1120_v30  ;;  %s1121_s19 = smov 126   ;;  %597 = vmatprep.mubr.bf16.mxu0 %v1128_v33  ;;  %vm423_vm1 = vcmask 1039360   ;;  %vm438_vm2 = vcmask 1031168   ;;  %vm453_vm3 = vcmask 900096   ;;  %vm468_vm4 = vcmask 891904  }
  0x21   : > { %s1306_s24 = smov (!%p338_p1, %s1109_s24), 1  ;;  %s1122_s20 = smov 127   ;;  %1074 = vset.pattern.permute.xlu1 %v1128_v33  ;;  %1075 = vset.pattern.permute.xlu0 %v1128_v33  ;;  %vm483_vm5 = vcmask 883712   ;;  %vm498_vm6 = vcmask 752640   ;;  %vm513_vm7 = vcmask 744448   ;;  %vm528_vm8 = vcmask 736256  }
  0x22   : > { %s923_s15 = sshll.u32 %s1306_s24, 5  ;;  %s1123_s21 = smov 110   ;;  %940 = vmatprep.mubr.msk.bf16.mxu1 %vm1129_vm0, %v1120_v30  ;;  %vm555_vm9 = vcmask 1043456   ;;  %vm551_vm10 = vcmask 588800  }
  0x23   : > { %s342_s18 = scalar_lea.vmem %s1292_s1, %s923_s15  ;;  %s1124_s22 = smov 108  }
  0x24   : > { %v382_v0 = vld [vmem:[%s342_s18 + $0x8] sm:$0xff]  ;;  %v383_v1 = vld [vmem:[%s342_s18 + $0x10] sm:$0xff]  ;;  %v381_v2 = vld [vmem:[%s342_s18] sm:$0xff]  ;;  %s1125_s23 = smov 109   ;;  %s1126_s27 = smov 91  }
  0x25   : > { %v390_v4 = vstv %s373_s13  ;;  %v384_v5 = vld [vmem:[%s342_s18 + $0x18] sm:$0xff]  ;;  %s1127_s29 = smov 92   ;;  %s1130_s30 = smov 90  }
  0x26   : > { %v385_v3 = vstv %s916_s14  ;;  %s917_s14 = sld [smem:[#allocation2 + $0x2]]  ;;  %s944_s15 = smul.u32 24, %s1306_s24 }
  0x27   : > { %v387_v6 = vmul.f32 %v385_v3, %v382_v0  ;;  %v388_v7 = vmul.f32 %v385_v3, %v383_v1  ;;  %v386_v8 = vmul.f32 %v385_v3, %v381_v2  ;;  %v389_v9 = vmul.f32 %v385_v3, %v384_v5 }
  0x28   : > { %s356_s18 = scalar_lea.vmem %s1296_s5, %s944_s15 }
  0x29   : > { %v392_v10 = vadd.f32 %v390_v4, %v387_v6  ;;  %v393_v11 = vadd.f32 %v390_v4, %v388_v7  ;;  %v391_v12 = vadd.f32 %v390_v4, %v386_v8  ;;  %v394_v13 = vadd.f32 %v390_v4, %v389_v9 }
  0x2b   : > { %v396_v14 = vmax.f32 %v392_v10, 0.0  ;;  %v397_v15 = vmax.f32 %v393_v11, 0.0  ;;  %v395_v16 = vmax.f32 %v391_v12, 0.0  ;;  %v398_v17 = vmax.f32 %v394_v13, 0.0 }
  0x2d   : > { %v400_v18 = vmin.f32 %v396_v14, 255.0  ;;  %v401_v19 = vmin.f32 %v397_v15, 255.0  ;;  %v399_v20 = vmin.f32 %v395_v16, 255.0  ;;  %v402_v21 = vmin.f32 %v398_v17, 255.0 }
  0x2f   : > { %v946_v22 = vround.rtne.f32 %v400_v18  ;;  %v947_v23 = vround.rtne.f32 %v401_v19  ;;  %v945_v24 = vround.rtne.f32 %v399_v20  ;;  %v948_v25 = vround.rtne.f32 %v402_v21 }
  0x31   : > { %v408_v26 = vsub.f32 %v946_v22, %v390_v4  ;;  %v1221_v27 = vsub.f32 %v947_v23, %v390_v4  ;;  %v1223_v28 = vsub.f32 %v945_v24, %v390_v4  ;;  %v410_v29 = vsub.f32 %v948_v25, %v390_v4 }
  0x33   : > { %v1009_v31 = vpack.i.bf16 %v1221_v27, %v408_v26  ;;  %v1004_v32 = vpack.i.bf16 %v410_v29, %v1223_v28  ;;  %v1069_v34 = vpack.i.bf16 %v408_v26, %v1223_v28 }
  0x35   : > { %1010 = vrot.lane.b32.xlu1 %v1009_v31, %s1121_s19  ;;  %1000 = vrot.lane.b32.xlu0 %v1009_v31, %s1122_s20 }
  0x39   : > { %1015 = vrot.lane.b32.xlu1 %v1009_v31, %s1123_s21  ;;  %1005 = vrot.lane.b32.xlu0 %v1004_v32, %s1122_s20 }
  0x3d   : > { %1025 = vrot.lane.b32.xlu1 %v1004_v32, %s1123_s21  ;;  %1020 = vrot.lane.b32.xlu0 %v1004_v32, %s1121_s19  ;;  %s914_s19 = sshll.u32 %s1306_s24, 3 }
  0x41   : > { %1035 = vrot.lane.b32.xlu1 %v1009_v31, %s1124_s22  ;;  %1030 = vrot.lane.b32.xlu0 %v1009_v31, %s1125_s23 }
  0x45   : > { %1045 = vrot.lane.b32.xlu1 %v1004_v32, %s1124_s22  ;;  %1040 = vrot.lane.b32.xlu0 %v1004_v32, %s1125_s23  ;;  %s364_s22 = scalar_lea.vmem %s1297_s6, %s914_s19 }
  0x49   : > { %1055 = vrot.lane.b32.xlu1 %v1009_v31, %s1126_s27  ;;  %1050 = vrot.lane.b32.xlu0 %v1009_v31, %s1127_s29 }
  0x4d   : > { %1065 = vrot.lane.b32.xlu1 %v1004_v32, %s1126_s27  ;;  %1060 = vrot.lane.b32.xlu0 %v1004_v32, %s1127_s29 }
  0x51   : > { %1070 = vrot.lane.b32.xlu0 %v1069_v34, %s1130_s30  ;;  %524 = vrot.lane.b32.xlu1 %v1221_v27, %s1130_s30 }
  0x55   : > { %526 = vrot.lane.b32.xlu0 %v410_v29, %s1130_s30  ;;  %653 = vperm.xlu1 %1074, %v650_v35   ;;  %s371_s30 = scalar_lea.vmem %s1298_s7, %s914_s19 }
  0xa7   : > { %v1011_v36 = vpop.permute.xlu1 %1010  ;;  %v1001_v37 = vpop.permute.xlu0 %1000 }
  0xa8   : > { %v1003_v38 = vunpack.i.h.bf16 %v1001_v37  ;;  %v1002_v39 = vunpack.i.l.bf16 %v1001_v37  ;;  %v1013_v40 = vunpack.i.h.bf16 %v1011_v36  ;;  %v1012_v41 = vunpack.i.l.bf16 %v1011_v36 }
  0xaa   : > { %v425_v42 = vsel %vm423_vm1, %v1002_v39, %v1003_v38  ;;  %v440_v52 = vsel %vm438_vm2, %v1012_v41, %v1013_v40 }
  0xab   : > { %v1016_v43 = vpop.permute.xlu1 %1015  ;;  %v1006_v44 = vpop.permute.xlu0 %1005  ;;  %v537_v45 = vpack.c.bf16 %v425_v42, %v408_v26 }
  0xac   : > { %v1018_v46 = vunpack.i.h.bf16 %v1016_v43  ;;  %v1017_v47 = vunpack.i.l.bf16 %v1016_v43  ;;  %v1008_v48 = vunpack.i.h.bf16 %v1006_v44  ;;  %v1007_v49 = vunpack.i.l.bf16 %v1006_v44 }
  0xad   : > { %565 = vmatprep.subr.bf16.mxu0 %v537_v45 }
  0xae   : > { %v424_v50 = vsel %vm423_vm1, %v1007_v49, %v1002_v39  ;;  %v426_v51 = vsel %vm423_vm1, %v1003_v38, %v1008_v48  ;;  %v455_v53 = vsel %vm453_vm3, %v1017_v47, %v1018_v46 }
  0xaf   : > { %v1026_v54 = vpop.permute.xlu1 %1025  ;;  %v1021_v55 = vpop.permute.xlu0 %1020  ;;  %v536_v56 = vpack.c.bf16 %v424_v50, %v1223_v28  ;;  %v538_v57 = vpack.c.bf16 %v426_v51, %v1221_v27  ;;  %v540_v58 = vpack.c.bf16 %v455_v53, %v440_v52 }
  0xb0   : > { %v1028_v59 = vunpack.i.h.bf16 %v1026_v54  ;;  %v1027_v60 = vunpack.i.l.bf16 %v1026_v54  ;;  %v1023_v61 = vunpack.i.h.bf16 %v1021_v55  ;;  %v1022_v62 = vunpack.i.l.bf16 %v1021_v55 }
  0xb1   : > { %566 = vmatpush1.bf16.msra.mxu0 %v536_v56  ;;  %931 = vmatpush3.bf16.msra.mxu1 %v538_v57 }
  0xb2   : > { %567 = vmatprep.subr.bf16.mxu0 %v540_v58  ;;  %932 = vmatprep.subr.bf16.mxu1 %v1120_v30  ;;  %v439_v63 = vsel %vm438_vm2, %v1022_v62, %v1012_v41  ;;  %v454_v0 = vsel %vm453_vm3, %v1027_v60, %v1017_v47  ;;  %v441_v1 = vsel %vm438_vm2, %v1013_v40, %v1023_v61  ;;  %v535_v61 = vld [vmem:[%s1293_s2] sm:$0xf] }
  0xb3   : > { %v1036_v2 = vpop.permute.xlu1 %1035  ;;  %v1031_v3 = vpop.permute.xlu0 %1030  ;;  %v539_v4 = vpack.c.bf16 %v454_v0, %v439_v63  ;;  %v456_v5 = vsel %vm453_vm3, %v1018_v46, %v1028_v59  ;;  %v665_v63 = vlaneseq }
  0xb4   : > { %v1038_v6 = vunpack.i.h.bf16 %v1036_v2  ;;  %v1037_v7 = vunpack.i.l.bf16 %v1036_v2  ;;  %v1033_v8 = vunpack.i.h.bf16 %v1031_v3  ;;  %v1032_v9 = vunpack.i.l.bf16 %v1031_v3 }
  0xb5   : > { %568 = vmatpush1.bf16.msra.mxu0 %v539_v4  ;;  %v541_v10 = vpack.c.bf16 %v456_v5, %v441_v1  ;;  %v666_v0 = vshrl.u32 %v665_v63, 7  ;;  %v646_v5 = vstv %s917_s14 }
  0xb6   : > { %v470_v11 = vsel %vm468_vm4, %v1032_v9, %v1033_v8  ;;  %v485_v12 = vsel %vm483_vm5, %v1037_v7, %v1038_v6 }
  0xb7   : > { %933 = vmatpush3.bf16.msra.mxu1 %v541_v10  ;;  %v1046_v13 = vpop.permute.xlu1 %1045  ;;  %v1041_v14 = vpop.permute.xlu0 %1040  ;;  %v543_v15 = vpack.c.bf16 %v485_v12, %v470_v11  ;;  %v667_v1 = vsub.s32 0, %v666_v0  ;;  %v671_v3 = vsub.s32 1, %v666_v0  ;;  %v675_v4 = vsub.s32 2, %v666_v0 }
  0xb8   : > { %v1048_v16 = vunpack.i.h.bf16 %v1046_v13  ;;  %v1047_v17 = vunpack.i.l.bf16 %v1046_v13  ;;  %v1043_v18 = vunpack.i.h.bf16 %v1041_v14  ;;  %v1042_v19 = vunpack.i.l.bf16 %v1041_v14  ;;  %934 = vmatprep.subr.bf16.mxu1 %v1120_v30 }
  0xb9   : > { %569 = vmatprep.subr.bf16.mxu0 %v543_v15 }
  0xba   : > { %v469_v20 = vsel %vm468_vm4, %v1042_v19, %v1032_v9  ;;  %v484_v21 = vsel %vm483_vm5, %v1047_v17, %v1037_v7  ;;  %v471_v22 = vsel %vm468_vm4, %v1033_v8, %v1043_v18  ;;  %v486_v23 = vsel %vm483_vm5, %v1038_v6, %v1048_v16 }
  0xbb   : > { %v1056_v24 = vpop.permute.xlu1 %1055  ;;  %v1051_v25 = vpop.permute.xlu0 %1050  ;;  %v542_v26 = vpack.c.bf16 %v484_v21, %v469_v20  ;;  %v544_v27 = vpack.c.bf16 %v486_v23, %v471_v22 }
  0xbc   : > { %v1058_v28 = vunpack.i.h.bf16 %v1056_v24  ;;  %v1057_v29 = vunpack.i.l.bf16 %v1056_v24  ;;  %v1053_v31 = vunpack.i.h.bf16 %v1051_v25  ;;  %v1052_v32 = vunpack.i.l.bf16 %v1051_v25 }
  0xbd   : > { %570 = vmatpush1.bf16.msra.mxu0 %v542_v26  ;;  %935 = vmatpush3.bf16.msra.mxu1 %v544_v27 }
  0xbe   : > { %v500_v34 = vsel %vm498_vm6, %v1052_v32, %v1053_v31  ;;  %v515_v35 = vsel %vm513_vm7, %v1057_v29, %v1058_v28  ;;  %936 = vmatprep.subr.bf16.mxu1 %v1120_v30 }
  0xbf   : > { %v1066_v36 = vpop.permute.xlu1 %1065  ;;  %v1061_v37 = vpop.permute.xlu0 %1060  ;;  %v546_v38 = vpack.c.bf16 %v515_v35, %v500_v34 }
  0xc0   : > { %v1068_v39 = vunpack.i.h.bf16 %v1066_v36  ;;  %v1067_v40 = vunpack.i.l.bf16 %v1066_v36  ;;  %v1063_v41 = vunpack.i.h.bf16 %v1061_v37  ;;  %v1062_v42 = vunpack.i.l.bf16 %v1061_v37 }
  0xc1   : > { %571 = vmatprep.subr.bf16.mxu0 %v546_v38 }
  0xc2   : > { %v499_v43 = vsel %vm498_vm6, %v1062_v42, %v1052_v32  ;;  %v514_v44 = vsel %vm513_vm7, %v1067_v40, %v1057_v29  ;;  %v501_v45 = vsel %vm498_vm6, %v1053_v31, %v1063_v41  ;;  %v516_v46 = vsel %vm513_vm7, %v1058_v28, %v1068_v39 }
  0xc3   : > { %v1071_v47 = vpop.permute.xlu0 %1070  ;;  %v525_v48 = vpop.permute.xlu1 %524  ;;  %v545_v49 = vpack.c.bf16 %v514_v44, %v499_v43  ;;  %v547_v50 = vpack.c.bf16 %v516_v46, %v501_v45 }
  0xc4   : > { %v1073_v51 = vunpack.i.h.bf16 %v1071_v47  ;;  %v1072_v52 = vunpack.i.l.bf16 %v1071_v47 }
  0xc5   : > { %572 = vmatpush1.bf16.msra.mxu0 %v545_v49  ;;  %937 = vmatpush3.bf16.msra.mxu1 %v547_v50 }
  0xc6   : > { %v530_v53 = vsel %vm528_vm8, %v1073_v51, %v525_v48  ;;  %v529_v54 = vsel %vm528_vm8, %v1072_v52, %v1073_v51  ;;  %938 = vmatprep.subr.bf16.mxu1 %v1120_v30  ;;  %v662_v30 = vld [vmem:[%s1295_s4] sm:$0x7] }
  0xc7   : > { %v549_v55 = vpack.c.bf16 %v530_v53, %v530_v53  ;;  %v527_v56 = vpop.permute.xlu0 %526  ;;  %v548_v57 = vpack.c.bf16 %v529_v54, %v529_v54  ;;  %vm663_vm11 = vcmp.gt.f32.partialorder %v662_v30, 0.5 }
  0xc8   : > { %v531_v58 = vsel %vm528_vm8, %v525_v48, %v527_v56  ;;  %v664_v2 = vsel %vm663_vm11, 1, %v1128_v33 }
  0xc9   : > { %v550_v59 = vpack.c.bf16 %v531_v58, %v531_v58  ;;  %918 = vmatprep.subr.msk.bf16.mxu0 %vm555_vm9, %v549_v55  ;;  %v557_v60 = vsel %vm555_vm9, %v548_v57, 0  ;;  %v668_v6 = vrot.slane %v664_v2, %v667_v1  ;;  %v672_v7 = vrot.slane %v664_v2, %v671_v3 }
  0xca   : > { %574 = vmatpush1.bf16.msra.mxu0 %v557_v60  ;;  %v676_v10 = vrot.slane %v664_v2, %v675_v4 }
  0xcb   : > { %v563_v62 = vsel %vm555_vm9, %v550_v59, 0  ;;  %vm677_vm12 = vcmp.eq.s32.totalorder %v668_v6, 1  ;;  %vm678_vm13 = vcmp.eq.s32.totalorder %v672_v7, 1 }
  0xcc   : > { %939 = vmatpush3.bf16.msra.mxu1 %v563_v62  ;;  %vm679_vm14 = vcmp.eq.s32.totalorder %v676_v10, 1 }
  0xcd   : > { %919 = vmatmul.mubr.msk.bf16.vlgmr.msra.gmra.mrb[0].mxu0 %vm551_vm10, %v535_v61 }
  0xcf   : > { %941 = vmatmul.mubr.msk.bf16.vlgmr.msra.gmra.mrb[0].mxu1 %vm551_vm10, %v535_v61 }
  0xd4   : > { %v654_v9 = vpop.permute.xlu1 %653 }
 0x1a0   : > { %v599_v8 = vpop.f32.mrb[0].mxu0 }
 0x1a1   : > { %v647_v11 = vmul.f32 %v646_v5, %v599_v8  ;;  %v601_v12 = vpop.f32.mrb[1].mxu0 }
 0x1a2   : > { %v648_v13 = vmul.f32 %v646_v5, %v601_v12  ;;  %v603_v14 = vpop.f32.mrb[2].mxu0  ;;  %v640_v15 = vpop.f32.mrb[0].mxu1 }
 0x1a3   : > { %v656_v33 = vadd.f32 %v654_v9, %v647_v11  ;;  %v649_v16 = vmul.f32 %v646_v5, %v640_v15  ;;  %v604_v17 = vpop.f32.mrb[3].mxu0  ;;  %v942_v18 = vpop.f32.mrb[1].mxu1 }
 0x1a4   : > { %v657_v19 = vadd.f32 %v654_v9, %v648_v13  ;;  %v643_v20 = vpop.f32.mrb[2].mxu1 }
 0x1a5   : > { %659 = vst [vmem:[%s356_s18] sm:$0xff] %v656_v33  ;;  %v658_v21 = vadd.f32 %v654_v9, %v649_v16  ;;  %v943_v22 = vpop.f32.mrb[3].mxu1  ;;  %v694_v23 = vsel %vm677_vm12, %v656_v33, -3.4e+38  ;;  %v680_v24 = vsel %vm677_vm12, %v656_v33, 3.4e+38 }
 0x1a6   : > { %660 = vst [vmem:[%s356_s18 + $0x8] sm:$0xff] %v657_v19  ;;  %v695_v25 = vsel %vm678_vm13, %v657_v19, -3.4e+38  ;;  %v681_v26 = vsel %vm678_vm13, %v657_v19, 3.4e+38 }
 0x1a7   : > { %661 = vst [vmem:[%s356_s18 + $0x10] sm:$0xff] %v658_v21  ;;  %v696_v27 = vsel %vm679_vm14, %v658_v21, -3.4e+38  ;;  %v697_v28 = vmax.f32 %v694_v23, %v695_v25  ;;  %v682_v29 = vsel %vm679_vm14, %v658_v21, 3.4e+38  ;;  %v683_v31 = vmin.f32 %v680_v24, %v681_v26 }
 0x1a9   : > { %v698_v32 = vmax.f32 %v697_v28, %v696_v27  ;;  %v684_v34 = vmin.f32 %v683_v31, %v682_v29 }
 0x1ab   : > { %699 = vmax.xlane.f32.xlu1 %v698_v32  ;;  %685 = vmin.xlane.f32.xlu0 %v684_v34 }
 0x238   : > { %v700_v35 = vpop.xlane.xlu1 %699  ;;  %v686_v36 = vpop.xlane.xlu0 %685 }
 0x239   : > { %v701_v37 = vrot.slane %v700_v35, 4  ;;  %v687_v38 = vrot.slane %v686_v36, 4 }
 0x23b   : > { %v702_v39 = vmax.f32 %v700_v35, %v701_v37  ;;  %v688_v40 = vmin.f32 %v686_v36, %v687_v38 }
 0x23d   : > { %v703_v41 = vrot.slane %v702_v39, 2  ;;  %v689_v42 = vrot.slane %v688_v40, 2 }
 0x23f   : > { %v704_v43 = vmax.f32 %v702_v39, %v703_v41  ;;  %v690_v44 = vmin.f32 %v688_v40, %v689_v42 }
 0x241   : > { %v691_v45 = vrot.slane %v690_v44, 1  ;;  %v705_v46 = vrot.slane %v704_v43, 1 }
 0x243   : > { %v692_v47 = vmin.f32 %v690_v44, %v691_v45  ;;  %v706_v48 = vmax.f32 %v704_v43, %v705_v46 }
 0x245   : > { %949 = vpush %v692_v47 }
 0x246   : > { %951 = vpush %v706_v48 }
 0x276   : > { %s950_s23 = spop %949 }
 0x277   : > { %v708_v49 = vstv %s950_s23  ;;  %s952_s8 = spop %951 }
 0x278   : > { %710 = vst [vmem:[%s364_s22] sm:$0xff] %v708_v49  ;;  %v711_v50 = vstv %s952_s8 }
 0x279   : > { %713 = vst [vmem:[%s371_s30] sm:$0xff] %v711_v50 }
 0x27a PF: > { %s19_s26 = sadd.s32 1, %s1117_s26   ;;  %s1301_s24 = smov %s1113_s25 }
 0x27b   : > { %p16_p2 = scmp.ge.s32.totalorder %s19_s26, 4   ;;  %s1302_s25 = smov %s1304_s28 }
 0x27d   :  { %18 = sbr.rel (!%p16_p2) target bundleno = 2 (0x2), region = 103 }
 0x284   :  { %784 = vsyncpa [#allocation3], 1 }
 0x285   :  { %786 = vsyncpa [#allocation3 + $0x1], 1 }

</bundles_post_ra>
